<compile_context>
chip_gen: v7x
topology: tpu7x:2x2x1
jax: 0.10.0
libtpu: 0.0.40
codegen_flags: <defaults>
</compile_context>

<pallas_src>
import math

import jax
import jax.numpy as jnp
from jax.experimental import pallas as pl
from jax.experimental.pallas import tpu as pltpu


def make_mha_kernel(n_head: int, head_dim: int):

    def mha_kernel(q_ref, k_ref, v_ref,
                   wq_ref, bq_ref, wk_ref, bk_ref, wv_ref, bv_ref,
                   wo_ref, bo_ref,
                   o_ref,
                   kproj_ref, vproj_ref, attn_ref):
        t = pl.program_id(1)

        # K/V projections depend only on the batch -> compute once per batch
        # (first q-tile) into VMEM scratch; reuse for every q-tile and head.
        @pl.when(t == 0)
        def _project_kv():
            kp = jnp.dot(k_ref[0], wk_ref[...], preferred_element_type=jnp.float32)
            vp = jnp.dot(v_ref[0], wv_ref[...], preferred_element_type=jnp.float32)
            kproj_ref[...] = (kp + bk_ref[...]).astype(jnp.bfloat16)
            vproj_ref[...] = (vp + bv_ref[...]).astype(jnp.bfloat16)

        # Full-width query projection for this q-tile (scale pre-folded into Wq/bq).
        qp = jnp.dot(q_ref[0], wq_ref[...], preferred_element_type=jnp.float32)
        qp = (qp + bq_ref[...]).astype(jnp.bfloat16)                    # (tq, D)

        # Per-head attention: static loop, static lane slices (no head grid axis,
        # no per-head weight DMA, no dynamic lane-dim indexing).
        for h in range(n_head):
            lo = h * head_dim
            hi = lo + head_dim
            qh = qp[:, lo:hi]                                           # (tq,  hd) bf16
            kh = kproj_ref[:, lo:hi]                                    # (Skv, hd) bf16
            vh = vproj_ref[:, lo:hi]                                    # (Skv, hd) bf16

            sims = jnp.einsum('qd,kd->qk', qh, kh,
                              preferred_element_type=jnp.float32)       # (tq, Skv) f32
            sims_max = jnp.max(sims, axis=-1, keepdims=True)
            p = jnp.exp(sims - sims_max)
            denom = jnp.sum(p, axis=-1, keepdims=True)
            p = (p * pl.reciprocal(denom, approx=True)).astype(jnp.bfloat16)

            attn_ref[:, lo:hi] = jnp.dot(p, vh,
                                         preferred_element_type=jnp.float32)

        # Output projection: one full-width (tq, D) x (D, D) matmul + bias,
        # written to the output block exactly once (f32 accumulation).
        attn = attn_ref[...].astype(jnp.bfloat16)
        out = jnp.dot(attn, wo_ref[...], preferred_element_type=jnp.float32)
        o_ref[0] = (out + bo_ref[...]).astype(o_ref.dtype)

    return mha_kernel


def multi_head_attention(q, k, v, params, *, n_head: int, q_tile=None):
    """q: (B, Sq, D); k, v: (B, Skv, D), float32.  params: dict of weights/biases."""
    B, Sq, D = q.shape
    Skv = k.shape[1]
    head_dim = D // n_head
    assert n_head * head_dim == D, "d_model must be divisible by n_head"

    # Bound the (tq, Skv) score tile / per-step VMEM (v7x has only 64 MiB).
    tq = q_tile if q_tile is not None else (Sq if Sq <= 256 else 256)
    assert Sq % tq == 0, "query length must be divisible by the q tile"
    n_qt = Sq // tq

    # One-time wrapper-side prep: bf16 MXU operands, scale folded into Wq / bq.
    scale = 1.0 / math.sqrt(head_dim)
    wq = (params["wq"] * scale).astype(jnp.bfloat16)
    bq = (params["bq"] * scale).astype(jnp.float32)
    wk = params["wk"].astype(jnp.bfloat16)
    bk = params["bk"].astype(jnp.float32)
    wv = params["wv"].astype(jnp.bfloat16)
    bv = params["bv"].astype(jnp.float32)
    wo = params["wo"].astype(jnp.bfloat16)
    bo = params["bo"].astype(jnp.float32)

    qb = q.astype(jnp.bfloat16)
    kb = k.astype(jnp.bfloat16)
    vb = v.astype(jnp.bfloat16)

    q_spec = pl.BlockSpec((1, tq, D), lambda b, t: (b, t, 0))
    kv_spec = pl.BlockSpec((1, Skv, D), lambda b, t: (b, 0, 0))   # constant over t
    w_spec = pl.BlockSpec((D, D), lambda b, t: (0, 0))            # resident, DMA'd once
    b_spec = pl.BlockSpec((1, D), lambda b, t: (0, 0))
    o_spec = pl.BlockSpec((1, tq, D), lambda b, t: (b, t, 0))

    # Size the scoped VMEM limit from the working set (+ headroom), capped at
    # the smallest physical VMEM across generations (v7x: 64 MiB per TC).
    bf16, f32 = 2, 4
    est = (2 * tq * D * (bf16 + f32)              # q block + out block (double buffered)
           + 2 * 2 * Skv * D * bf16               # k, v input blocks (double buffered)
           + 2 * 4 * D * D * bf16                 # 4 resident weight matrices
           + 2 * 4 * D * f32                      # 4 biases
           + 2 * Skv * D * bf16                   # projected K/V scratch
           + tq * D * f32                         # head-output scratch
           + 3 * tq * Skv * f32 + 2 * tq * D * f32)  # score/exp/misc temporaries
    vmem_limit = min(max(int(est * 1.25) + (4 << 20), 32 << 20), 64 << 20)

    return pl.pallas_call(
        make_mha_kernel(n_head, head_dim),
        out_shape=jax.ShapeDtypeStruct((B, Sq, D), q.dtype),
        grid_spec=pltpu.PrefetchScalarGridSpec(
            num_scalar_prefetch=0,
            grid=(B, n_qt),
            in_specs=[q_spec, kv_spec, kv_spec,
                      w_spec, b_spec, w_spec, b_spec, w_spec, b_spec,
                      w_spec, b_spec],
            out_specs=o_spec,
            scratch_shapes=[
                pltpu.VMEM((Skv, D), jnp.bfloat16),   # projected K (per batch)
                pltpu.VMEM((Skv, D), jnp.bfloat16),   # projected V (per batch)
                pltpu.VMEM((tq, D), jnp.float32),     # concatenated head outputs
            ]),
        compiler_params=pltpu.CompilerParams(
            dimension_semantics=("parallel", "arbitrary"),
            vmem_limit_bytes=vmem_limit),
    )(qb, kb, vb, wq, bq, wk, bk, wv, bv, wo, bo)


def reference_mha(q, k, v, params, *, n_head: int):
    """Pure-JAX f32 reference mirroring the PyTorch forward exactly."""
    B, S, D = q.shape
    hd = D // n_head
    qp = q @ params["wq"] + params["bq"][0]
    kp = k @ params["wk"] + params["bk"][0]
    vp = v @ params["wv"] + params["bv"][0]
    qp = qp.reshape(B, S, n_head, hd).transpose(0, 2, 1, 3)
    kp = kp.reshape(B, S, n_head, hd).transpose(0, 2, 1, 3)
    vp = vp.reshape(B, S, n_head, hd).transpose(0, 2, 1, 3)
    sims = jnp.einsum("bhqd,bhkd->bhqk", qp, kp) / math.sqrt(hd)
    attn_w = jax.nn.softmax(sims, axis=-1)
    attn_o = jnp.einsum("bhqk,bhkd->bhqd", attn_w, vp)
    attn_o = attn_o.transpose(0, 2, 1, 3).reshape(B, S, D)
    return attn_o @ params["wo"] + params["bo"][0]


if __name__ == "__main__":
    # Small shapes consistent with the module.
    B, S, d_model, n_head = 2, 8, 32, 4

    key = jax.random.PRNGKey(0)
    keys = jax.random.split(key, 11)

    def init_w(k_):
        return (jax.random.uniform(k_, (d_model, d_model), jnp.float32) - 0.5) * (
            2.0 / math.sqrt(d_model))

    def init_b(k_):
        return (jax.random.uniform(k_, (1, d_model), jnp.float32) - 0.5) * (
            2.0 / math.sqrt(d_model))

    params = {
        "wq": init_w(keys[0]), "bq": init_b(keys[1]),
        "wk": init_w(keys[2]), "bk": init_b(keys[3]),
        "wv": init_w(keys[4]), "bv": init_b(keys[5]),
        "wo": init_w(keys[6]), "bo": init_b(keys[7]),
    }

    q = jax.random.normal(keys[8], (B, S, d_model), jnp.float32)
    k = jax.random.normal(keys[9], (B, S, d_model), jnp.float32)
    v = jax.random.normal(keys[10], (B, S, d_model), jnp.float32)

    out = multi_head_attention(q, k, v, params, n_head=n_head)
    out = jax.block_until_ready(out)

    ref = reference_mha(q, k, v, params, n_head=n_head)
    assert out.shape == (B, S, d_model)
    # Matmul operands run in bf16 on the MXU (f32 accumulation, f32 softmax),
    # so compare against the f32 reference at bf16-appropriate tolerance.
    assert jnp.allclose(out, ref, atol=5e-2, rtol=5e-2), "mismatch vs reference"

    print("KERNEL_OK")
</pallas_src>

<mosaic_0001>
module attributes {stable_mosaic.version = 11 : i64} {
  func.func @mha_kernel(%arg0: i32, %arg1: i32, %arg2: memref<1x8x32xbf16, #tpu.memory_space<vmem>>, %arg3: memref<1x8x32xbf16, #tpu.memory_space<vmem>>, %arg4: memref<1x8x32xbf16, #tpu.memory_space<vmem>>, %arg5: memref<32x32xbf16, #tpu.memory_space<vmem>>, %arg6: memref<1x32xf32, #tpu.memory_space<vmem>>, %arg7: memref<32x32xbf16, #tpu.memory_space<vmem>>, %arg8: memref<1x32xf32, #tpu.memory_space<vmem>>, %arg9: memref<32x32xbf16, #tpu.memory_space<vmem>>, %arg10: memref<1x32xf32, #tpu.memory_space<vmem>>, %arg11: memref<32x32xbf16, #tpu.memory_space<vmem>>, %arg12: memref<1x32xf32, #tpu.memory_space<vmem>>, %arg13: memref<1x8x32xf32, #tpu.memory_space<vmem>>, %arg14: memref<8x32xbf16, #tpu.memory_space<vmem>>, %arg15: memref<8x32xbf16, #tpu.memory_space<vmem>>, %arg16: memref<8x32xf32, #tpu.memory_space<vmem>>) attributes {dimension_semantics = [#tpu.dimension_semantics<parallel>, #tpu.dimension_semantics<arbitrary>], iteration_bounds = array<i64: 2, 1>, scalar_prefetch = 0 : i64, scratch_operands = 3 : i64, tpu.core_type = #tpu.core_type<tc>, window_params = [{transform_indices = @transform_0, window_bounds = array<i64: 1, 8, 32>}, {transform_indices = @transform_1, window_bounds = array<i64: 1, 8, 32>}, {transform_indices = @transform_2, window_bounds = array<i64: 1, 8, 32>}, {pipeline_mode = #tpu.pipeline_mode<synchronous>, transform_indices = @transform_3, window_bounds = array<i64: 32, 32>}, {pipeline_mode = #tpu.pipeline_mode<synchronous>, transform_indices = @transform_4, window_bounds = array<i64: 1, 32>}, {pipeline_mode = #tpu.pipeline_mode<synchronous>, transform_indices = @transform_5, window_bounds = array<i64: 32, 32>}, {pipeline_mode = #tpu.pipeline_mode<synchronous>, transform_indices = @transform_6, window_bounds = array<i64: 1, 32>}, {pipeline_mode = #tpu.pipeline_mode<synchronous>, transform_indices = @transform_7, window_bounds = array<i64: 32, 32>}, {pipeline_mode = #tpu.pipeline_mode<synchronous>, transform_indices = @transform_8, window_bounds = array<i64: 1, 32>}, {pipeline_mode = #tpu.pipeline_mode<synchronous>, transform_indices = @transform_9, window_bounds = array<i64: 32, 32>}, {pipeline_mode = #tpu.pipeline_mode<synchronous>, transform_indices = @transform_10, window_bounds = array<i64: 1, 32>}, {transform_indices = @transform_11, window_bounds = array<i64: 1, 8, 32>}]} {
    %c0_i32 = arith.constant 0 : i32
    %0 = arith.cmpi eq, %arg1, %c0_i32 : i32
    %1 = arith.extui %0 : i1 to i32
    %c0_i32_0 = arith.constant 0 : i32
    %2 = arith.cmpi ne, %1, %c0_i32_0 : i32
    scf.if %2 {
      %c0_54 = arith.constant 0 : index
      %c0_55 = arith.constant 0 : index
      %c0_56 = arith.constant 0 : index
      %89 = vector.load %arg3[%c0_54, %c0_55, %c0_56] : memref<1x8x32xbf16, #tpu.memory_space<vmem>>, vector<1x8x32xbf16>
      %90 = vector.shape_cast %89 : vector<1x8x32xbf16> to vector<8x32xbf16>
      %c0_57 = arith.constant 0 : index
      %c0_58 = arith.constant 0 : index
      %91 = vector.load %arg7[%c0_57, %c0_58] : memref<32x32xbf16, #tpu.memory_space<vmem>>, vector<32x32xbf16>
      %cst_59 = arith.constant dense<0.000000e+00> : vector<8x32xf32>
      %92 = tpu.matmul %90, %91, %cst_59 {dimension_numbers = #tpu.dot_dimension_numbers<[1], [0], [0], [1], [0, 0, 1, 1], [], []>} : vector<8x32xbf16>, vector<32x32xbf16>, vector<8x32xf32> -> vector<8x32xf32>
      %c0_60 = arith.constant 0 : index
      %c0_61 = arith.constant 0 : index
      %c0_62 = arith.constant 0 : index
      %93 = vector.load %arg4[%c0_60, %c0_61, %c0_62] : memref<1x8x32xbf16, #tpu.memory_space<vmem>>, vector<1x8x32xbf16>
      %94 = vector.shape_cast %93 : vector<1x8x32xbf16> to vector<8x32xbf16>
      %c0_63 = arith.constant 0 : index
      %c0_64 = arith.constant 0 : index
      %95 = vector.load %arg9[%c0_63, %c0_64] : memref<32x32xbf16, #tpu.memory_space<vmem>>, vector<32x32xbf16>
      %cst_65 = arith.constant dense<0.000000e+00> : vector<8x32xf32>
      %96 = tpu.matmul %94, %95, %cst_65 {dimension_numbers = #tpu.dot_dimension_numbers<[1], [0], [0], [1], [0, 0, 1, 1], [], []>} : vector<8x32xbf16>, vector<32x32xbf16>, vector<8x32xf32> -> vector<8x32xf32>
      %c0_66 = arith.constant 0 : index
      %c0_67 = arith.constant 0 : index
      %97 = vector.load %arg8[%c0_66, %c0_67] : memref<1x32xf32, #tpu.memory_space<vmem>>, vector<1x32xf32>
      %98 = vector.broadcast %97 : vector<1x32xf32> to vector<8x32xf32>
      %99 = arith.addf %92, %98 : vector<8x32xf32>
      %100 = arith.truncf %99 : vector<8x32xf32> to vector<8x32xbf16>
      %c0_68 = arith.constant 0 : index
      %c0_69 = arith.constant 0 : index
      %101 = vector.load %arg14[%c0_68, %c0_69] : memref<8x32xbf16, #tpu.memory_space<vmem>>, vector<8x32xbf16>
      tpu.vector_store %arg14[%c0_68, %c0_69], %100 {strides = array<i32>} : memref<8x32xbf16, #tpu.memory_space<vmem>>, vector<8x32xbf16>,
      %c0_70 = arith.constant 0 : index
      %c0_71 = arith.constant 0 : index
      %102 = vector.load %arg10[%c0_70, %c0_71] : memref<1x32xf32, #tpu.memory_space<vmem>>, vector<1x32xf32>
      %103 = vector.broadcast %102 : vector<1x32xf32> to vector<8x32xf32>
      %104 = arith.addf %96, %103 : vector<8x32xf32>
      %105 = arith.truncf %104 : vector<8x32xf32> to vector<8x32xbf16>
      %c0_72 = arith.constant 0 : index
      %c0_73 = arith.constant 0 : index
      %106 = vector.load %arg15[%c0_72, %c0_73] : memref<8x32xbf16, #tpu.memory_space<vmem>>, vector<8x32xbf16>
      tpu.vector_store %arg15[%c0_72, %c0_73], %105 {strides = array<i32>} : memref<8x32xbf16, #tpu.memory_space<vmem>>, vector<8x32xbf16>,
    } else {
    }
    %c0 = arith.constant 0 : index
    %c0_1 = arith.constant 0 : index
    %c0_2 = arith.constant 0 : index
    %3 = vector.load %arg2[%c0, %c0_1, %c0_2] : memref<1x8x32xbf16, #tpu.memory_space<vmem>>, vector<1x8x32xbf16>
    %4 = vector.shape_cast %3 : vector<1x8x32xbf16> to vector<8x32xbf16>
    %c0_3 = arith.constant 0 : index
    %c0_4 = arith.constant 0 : index
    %5 = vector.load %arg5[%c0_3, %c0_4] : memref<32x32xbf16, #tpu.memory_space<vmem>>, vector<32x32xbf16>
    %cst = arith.constant dense<0.000000e+00> : vector<8x32xf32>
    %6 = tpu.matmul %4, %5, %cst {dimension_numbers = #tpu.dot_dimension_numbers<[1], [0], [0], [1], [0, 0, 1, 1], [], []>} : vector<8x32xbf16>, vector<32x32xbf16>, vector<8x32xf32> -> vector<8x32xf32>
    %c0_5 = arith.constant 0 : index
    %c0_6 = arith.constant 0 : index
    %7 = vector.load %arg6[%c0_5, %c0_6] : memref<1x32xf32, #tpu.memory_space<vmem>>, vector<1x32xf32>
    %8 = vector.broadcast %7 : vector<1x32xf32> to vector<8x32xf32>
    %9 = arith.addf %6, %8 : vector<8x32xf32>
    %10 = arith.truncf %9 : vector<8x32xf32> to vector<8x32xbf16>
    %11 = vector.extract_strided_slice %10 {offsets = [0, 0], sizes = [8, 8], strides = [1, 1]} : vector<8x32xbf16> to vector<8x8xbf16>
    %c0_7 = arith.constant 0 : index
    %c0_8 = arith.constant 0 : index
    %12 = vector.load %arg14[%c0_7, %c0_8] : memref<8x32xbf16, #tpu.memory_space<vmem>>, vector<8x8xbf16>
    %c0_9 = arith.constant 0 : index
    %c0_10 = arith.constant 0 : index
    %13 = vector.load %arg15[%c0_9, %c0_10] : memref<8x32xbf16, #tpu.memory_space<vmem>>, vector<8x8xbf16>
    "tpu.trace_start"() <{level = 10 : i32, message = "qd,kd->qk"}> : () -> ()
    %cst_11 = arith.constant dense<0.000000e+00> : vector<8x8xf32>
    %14 = tpu.matmul %11, %12, %cst_11 {dimension_numbers = #tpu.dot_dimension_numbers<[1], [1], [0], [0], [0, 0, 1, 0], [], []>} : vector<8x8xbf16>, vector<8x8xbf16>, vector<8x8xf32> -> vector<8x8xf32>
    "tpu.trace_stop"() : () -> ()
    %cst_12 = arith.constant dense<0xFF800000> : vector<8xf32>
    %15 = vector.multi_reduction <maximumf>, %14, %cst_12 [1] : vector<8x8xf32> to vector<8xf32>
    %16 = vector.shape_cast %15 : vector<8xf32> to vector<8x1xf32>
    %17 = vector.broadcast %16 : vector<8x1xf32> to vector<8x8xf32>
    %18 = arith.subf %14, %17 : vector<8x8xf32>
    %19 = math.exp %18 : vector<8x8xf32>
    %cst_13 = arith.constant dense<0.000000e+00> : vector<8xf32>
    %20 = vector.multi_reduction <add>, %19, %cst_13 [1] : vector<8x8xf32> to vector<8xf32>
    %21 = vector.shape_cast %20 : vector<8xf32> to vector<8x1xf32>
    %22 = tpu.reciprocal %21 {approx = true} : vector<8x1xf32> -> vector<8x1xf32>
    %23 = vector.broadcast %22 : vector<8x1xf32> to vector<8x8xf32>
    %24 = arith.mulf %19, %23 : vector<8x8xf32>
    %25 = arith.truncf %24 : vector<8x8xf32> to vector<8x8xbf16>
    %cst_14 = arith.constant dense<0.000000e+00> : vector<8x8xf32>
    %26 = tpu.matmul %25, %13, %cst_14 {dimension_numbers = #tpu.dot_dimension_numbers<[1], [0], [0], [1], [0, 0, 1, 1], [], []>} : vector<8x8xbf16>, vector<8x8xbf16>, vector<8x8xf32> -> vector<8x8xf32>
    %c0_15 = arith.constant 0 : index
    %c0_16 = arith.constant 0 : index
    %27 = vector.load %arg16[%c0_15, %c0_16] : memref<8x32xf32, #tpu.memory_space<vmem>>, vector<8x8xf32>
    tpu.vector_store %arg16[%c0_15, %c0_16], %26 {strides = array<i32>} : memref<8x32xf32, #tpu.memory_space<vmem>>, vector<8x8xf32>,
    %28 = vector.extract_strided_slice %10 {offsets = [0, 8], sizes = [8, 8], strides = [1, 1]} : vector<8x32xbf16> to vector<8x8xbf16>
    %c0_17 = arith.constant 0 : index
    %c8 = arith.constant 8 : index
    %29 = vector.load %arg14[%c0_17, %c8] : memref<8x32xbf16, #tpu.memory_space<vmem>>, vector<8x8xbf16>
    %c0_18 = arith.constant 0 : index
    %c8_19 = arith.constant 8 : index
    %30 = vector.load %arg15[%c0_18, %c8_19] : memref<8x32xbf16, #tpu.memory_space<vmem>>, vector<8x8xbf16>
    "tpu.trace_start"() <{level = 10 : i32, message = "qd,kd->qk"}> : () -> ()
    %cst_20 = arith.constant dense<0.000000e+00> : vector<8x8xf32>
    %31 = tpu.matmul %28, %29, %cst_20 {dimension_numbers = #tpu.dot_dimension_numbers<[1], [1], [0], [0], [0, 0, 1, 0], [], []>} : vector<8x8xbf16>, vector<8x8xbf16>, vector<8x8xf32> -> vector<8x8xf32>
    "tpu.trace_stop"() : () -> ()
    %cst_21 = arith.constant dense<0xFF800000> : vector<8xf32>
    %32 = vector.multi_reduction <maximumf>, %31, %cst_21 [1] : vector<8x8xf32> to vector<8xf32>
    %33 = vector.shape_cast %32 : vector<8xf32> to vector<8x1xf32>
    %34 = vector.broadcast %33 : vector<8x1xf32> to vector<8x8xf32>
    %35 = arith.subf %31, %34 : vector<8x8xf32>
    %36 = math.exp %35 : vector<8x8xf32>
    %cst_22 = arith.constant dense<0.000000e+00> : vector<8xf32>
    %37 = vector.multi_reduction <add>, %36, %cst_22 [1] : vector<8x8xf32> to vector<8xf32>
    %38 = vector.shape_cast %37 : vector<8xf32> to vector<8x1xf32>
    %39 = tpu.reciprocal %38 {approx = true} : vector<8x1xf32> -> vector<8x1xf32>
    %40 = vector.broadcast %39 : vector<8x1xf32> to vector<8x8xf32>
    %41 = arith.mulf %36, %40 : vector<8x8xf32>
    %42 = arith.truncf %41 : vector<8x8xf32> to vector<8x8xbf16>
    %cst_23 = arith.constant dense<0.000000e+00> : vector<8x8xf32>
    %43 = tpu.matmul %42, %30, %cst_23 {dimension_numbers = #tpu.dot_dimension_numbers<[1], [0], [0], [1], [0, 0, 1, 1], [], []>} : vector<8x8xbf16>, vector<8x8xbf16>, vector<8x8xf32> -> vector<8x8xf32>
    %c0_24 = arith.constant 0 : index
    %c8_25 = arith.constant 8 : index
    %44 = vector.load %arg16[%c0_24, %c8_25] : memref<8x32xf32, #tpu.memory_space<vmem>>, vector<8x8xf32>
    tpu.vector_store %arg16[%c0_24, %c8_25], %43 {strides = array<i32>} : memref<8x32xf32, #tpu.memory_space<vmem>>, vector<8x8xf32>,
    %45 = vector.extract_strided_slice %10 {offsets = [0, 16], sizes = [8, 8], strides = [1, 1]} : vector<8x32xbf16> to vector<8x8xbf16>
    %c0_26 = arith.constant 0 : index
    %c16 = arith.constant 16 : index
    %46 = vector.load %arg14[%c0_26, %c16] : memref<8x32xbf16, #tpu.memory_space<vmem>>, vector<8x8xbf16>
    %c0_27 = arith.constant 0 : index
    %c16_28 = arith.constant 16 : index
    %47 = vector.load %arg15[%c0_27, %c16_28] : memref<8x32xbf16, #tpu.memory_space<vmem>>, vector<8x8xbf16>
    "tpu.trace_start"() <{level = 10 : i32, message = "qd,kd->qk"}> : () -> ()
    %cst_29 = arith.constant dense<0.000000e+00> : vector<8x8xf32>
    %48 = tpu.matmul %45, %46, %cst_29 {dimension_numbers = #tpu.dot_dimension_numbers<[1], [1], [0], [0], [0, 0, 1, 0], [], []>} : vector<8x8xbf16>, vector<8x8xbf16>, vector<8x8xf32> -> vector<8x8xf32>
    "tpu.trace_stop"() : () -> ()
    %cst_30 = arith.constant dense<0xFF800000> : vector<8xf32>
    %49 = vector.multi_reduction <maximumf>, %48, %cst_30 [1] : vector<8x8xf32> to vector<8xf32>
    %50 = vector.shape_cast %49 : vector<8xf32> to vector<8x1xf32>
    %51 = vector.broadcast %50 : vector<8x1xf32> to vector<8x8xf32>
    %52 = arith.subf %48, %51 : vector<8x8xf32>
    %53 = math.exp %52 : vector<8x8xf32>
    %cst_31 = arith.constant dense<0.000000e+00> : vector<8xf32>
    %54 = vector.multi_reduction <add>, %53, %cst_31 [1] : vector<8x8xf32> to vector<8xf32>
    %55 = vector.shape_cast %54 : vector<8xf32> to vector<8x1xf32>
    %56 = tpu.reciprocal %55 {approx = true} : vector<8x1xf32> -> vector<8x1xf32>
    %57 = vector.broadcast %56 : vector<8x1xf32> to vector<8x8xf32>
    %58 = arith.mulf %53, %57 : vector<8x8xf32>
    %59 = arith.truncf %58 : vector<8x8xf32> to vector<8x8xbf16>
    %cst_32 = arith.constant dense<0.000000e+00> : vector<8x8xf32>
    %60 = tpu.matmul %59, %47, %cst_32 {dimension_numbers = #tpu.dot_dimension_numbers<[1], [0], [0], [1], [0, 0, 1, 1], [], []>} : vector<8x8xbf16>, vector<8x8xbf16>, vector<8x8xf32> -> vector<8x8xf32>
    %c0_33 = arith.constant 0 : index
    %c16_34 = arith.constant 16 : index
    %61 = vector.load %arg16[%c0_33, %c16_34] : memref<8x32xf32, #tpu.memory_space<vmem>>, vector<8x8xf32>
    tpu.vector_store %arg16[%c0_33, %c16_34], %60 {strides = array<i32>} : memref<8x32xf32, #tpu.memory_space<vmem>>, vector<8x8xf32>,
    %62 = vector.extract_strided_slice %10 {offsets = [0, 24], sizes = [8, 8], strides = [1, 1]} : vector<8x32xbf16> to vector<8x8xbf16>
    %c0_35 = arith.constant 0 : index
    %c24 = arith.constant 24 : index
    %63 = vector.load %arg14[%c0_35, %c24] : memref<8x32xbf16, #tpu.memory_space<vmem>>, vector<8x8xbf16>
    %c0_36 = arith.constant 0 : index
    %c24_37 = arith.constant 24 : index
    %64 = vector.load %arg15[%c0_36, %c24_37] : memref<8x32xbf16, #tpu.memory_space<vmem>>, vector<8x8xbf16>
    "tpu.trace_start"() <{level = 10 : i32, message = "qd,kd->qk"}> : () -> ()
    %cst_38 = arith.constant dense<0.000000e+00> : vector<8x8xf32>
    %65 = tpu.matmul %62, %63, %cst_38 {dimension_numbers = #tpu.dot_dimension_numbers<[1], [1], [0], [0], [0, 0, 1, 0], [], []>} : vector<8x8xbf16>, vector<8x8xbf16>, vector<8x8xf32> -> vector<8x8xf32>
    "tpu.trace_stop"() : () -> ()
    %cst_39 = arith.constant dense<0xFF800000> : vector<8xf32>
    %66 = vector.multi_reduction <maximumf>, %65, %cst_39 [1] : vector<8x8xf32> to vector<8xf32>
    %67 = vector.shape_cast %66 : vector<8xf32> to vector<8x1xf32>
    %68 = vector.broadcast %67 : vector<8x1xf32> to vector<8x8xf32>
    %69 = arith.subf %65, %68 : vector<8x8xf32>
    %70 = math.exp %69 : vector<8x8xf32>
    %cst_40 = arith.constant dense<0.000000e+00> : vector<8xf32>
    %71 = vector.multi_reduction <add>, %70, %cst_40 [1] : vector<8x8xf32> to vector<8xf32>
    %72 = vector.shape_cast %71 : vector<8xf32> to vector<8x1xf32>
    %73 = tpu.reciprocal %72 {approx = true} : vector<8x1xf32> -> vector<8x1xf32>
    %74 = vector.broadcast %73 : vector<8x1xf32> to vector<8x8xf32>
    %75 = arith.mulf %70, %74 : vector<8x8xf32>
    %76 = arith.truncf %75 : vector<8x8xf32> to vector<8x8xbf16>
    %cst_41 = arith.constant dense<0.000000e+00> : vector<8x8xf32>
    %77 = tpu.matmul %76, %64, %cst_41 {dimension_numbers = #tpu.dot_dimension_numbers<[1], [0], [0], [1], [0, 0, 1, 1], [], []>} : vector<8x8xbf16>, vector<8x8xbf16>, vector<8x8xf32> -> vector<8x8xf32>
    %c0_42 = arith.constant 0 : index
    %c24_43 = arith.constant 24 : index
    %78 = vector.load %arg16[%c0_42, %c24_43] : memref<8x32xf32, #tpu.memory_space<vmem>>, vector<8x8xf32>
    tpu.vector_store %arg16[%c0_42, %c24_43], %77 {strides = array<i32>} : memref<8x32xf32, #tpu.memory_space<vmem>>, vector<8x8xf32>,
    %c0_44 = arith.constant 0 : index
    %c0_45 = arith.constant 0 : index
    %79 = vector.load %arg16[%c0_44, %c0_45] : memref<8x32xf32, #tpu.memory_space<vmem>>, vector<8x32xf32>
    %80 = arith.truncf %79 : vector<8x32xf32> to vector<8x32xbf16>
    %c0_46 = arith.constant 0 : index
    %c0_47 = arith.constant 0 : index
    %81 = vector.load %arg11[%c0_46, %c0_47] : memref<32x32xbf16, #tpu.memory_space<vmem>>, vector<32x32xbf16>
    %cst_48 = arith.constant dense<0.000000e+00> : vector<8x32xf32>
    %82 = tpu.matmul %80, %81, %cst_48 {dimension_numbers = #tpu.dot_dimension_numbers<[1], [0], [0], [1], [0, 0, 1, 1], [], []>} : vector<8x32xbf16>, vector<32x32xbf16>, vector<8x32xf32> -> vector<8x32xf32>
    %c0_49 = arith.constant 0 : index
    %c0_50 = arith.constant 0 : index
    %83 = vector.load %arg12[%c0_49, %c0_50] : memref<1x32xf32, #tpu.memory_space<vmem>>, vector<1x32xf32>
    %84 = vector.broadcast %83 : vector<1x32xf32> to vector<8x32xf32>
    %85 = arith.addf %82, %84 : vector<8x32xf32>
    %c0_51 = arith.constant 0 : index
    %c0_52 = arith.constant 0 : index
    %c0_53 = arith.constant 0 : index
    %86 = vector.load %arg13[%c0_51, %c0_52, %c0_53] : memref<1x8x32xf32, #tpu.memory_space<vmem>>, vector<1x8x32xf32>
    %87 = vector.shape_cast %86 : vector<1x8x32xf32> to vector<8x32xf32>
    %88 = vector.shape_cast %85 : vector<8x32xf32> to vector<1x8x32xf32>
    tpu.vector_store %arg13[%c0_51, %c0_52, %c0_53], %88 {strides = array<i32>} : memref<1x8x32xf32, #tpu.memory_space<vmem>>, vector<1x8x32xf32>,
    return
  }
  func.func @transform_0(%arg0: i32, %arg1: i32) -> (i32, i32, i32) {
    %c0_i32 = arith.constant 0 : i32
    %c0_i32_0 = arith.constant 0 : i32
    return %arg0, %arg1, %c0_i32 : i32, i32, i32
  }
  func.func @transform_1(%arg0: i32, %arg1: i32) -> (i32, i32, i32) {
    %c0_i32 = arith.constant 0 : i32
    %c0_i32_0 = arith.constant 0 : i32
    %c0_i32_1 = arith.constant 0 : i32
    return %arg0, %c0_i32, %c0_i32_0 : i32, i32, i32
  }
  func.func @transform_2(%arg0: i32, %arg1: i32) -> (i32, i32, i32) {
    %c0_i32 = arith.constant 0 : i32
    %c0_i32_0 = arith.constant 0 : i32
    %c0_i32_1 = arith.constant 0 : i32
    return %arg0, %c0_i32, %c0_i32_0 : i32, i32, i32
  }
  func.func @transform_3(%arg0: i32, %arg1: i32) -> (i32, i32) {
    %c0_i32 = arith.constant 0 : i32
    %c0_i32_0 = arith.constant 0 : i32
    %c0_i32_1 = arith.constant 0 : i32
    return %c0_i32, %c0_i32_0 : i32, i32
  }
  func.func @transform_4(%arg0: i32, %arg1: i32) -> (i32, i32) {
    %c0_i32 = arith.constant 0 : i32
    %c0_i32_0 = arith.constant 0 : i32
    %c0_i32_1 = arith.constant 0 : i32
    return %c0_i32, %c0_i32_0 : i32, i32
  }
  func.func @transform_5(%arg0: i32, %arg1: i32) -> (i32, i32) {
    %c0_i32 = arith.constant 0 : i32
    %c0_i32_0 = arith.constant 0 : i32
    %c0_i32_1 = arith.constant 0 : i32
    return %c0_i32, %c0_i32_0 : i32, i32
  }
  func.func @transform_6(%arg0: i32, %arg1: i32) -> (i32, i32) {
    %c0_i32 = arith.constant 0 : i32
    %c0_i32_0 = arith.constant 0 : i32
    %c0_i32_1 = arith.constant 0 : i32
    return %c0_i32, %c0_i32_0 : i32, i32
  }
  func.func @transform_7(%arg0: i32, %arg1: i32) -> (i32, i32) {
    %c0_i32 = arith.constant 0 : i32
    %c0_i32_0 = arith.constant 0 : i32
    %c0_i32_1 = arith.constant 0 : i32
    return %c0_i32, %c0_i32_0 : i32, i32
  }
  func.func @transform_8(%arg0: i32, %arg1: i32) -> (i32, i32) {
    %c0_i32 = arith.constant 0 : i32
    %c0_i32_0 = arith.constant 0 : i32
    %c0_i32_1 = arith.constant 0 : i32
    return %c0_i32, %c0_i32_0 : i32, i32
  }
  func.func @transform_9(%arg0: i32, %arg1: i32) -> (i32, i32) {
    %c0_i32 = arith.constant 0 : i32
    %c0_i32_0 = arith.constant 0 : i32
    %c0_i32_1 = arith.constant 0 : i32
    return %c0_i32, %c0_i32_0 : i32, i32
  }
  func.func @transform_10(%arg0: i32, %arg1: i32) -> (i32, i32) {
    %c0_i32 = arith.constant 0 : i32
    %c0_i32_0 = arith.constant 0 : i32
    %c0_i32_1 = arith.constant 0 : i32
    return %c0_i32, %c0_i32_0 : i32, i32
  }
  func.func @transform_11(%arg0: i32, %arg1: i32) -> (i32, i32, i32) {
    %c0_i32 = arith.constant 0 : i32
    %c0_i32_0 = arith.constant 0 : i32
    return %arg0, %arg1, %c0_i32 : i32, i32, i32
  }
}

</mosaic_0001>

<bundles_post_ra>
// kernel: tpu_custom_call.1
= control target key start
LH: loop header
LB: loop body
LE: loop exit
PB: predicated region body
PF: predicated region fallthrough
CT: control target
= control target key end

     0   :  { %s2560_s0 = inlined_call_operand.hbm [shape: bf16[2,8,32], index: 0, kind: input, shape index: {}]   ;;  %s2561_s1 = inlined_call_operand.hbm [shape: bf16[2,8,32], index: 1, kind: input, shape index: {}]   ;;  %s2562_s2 = inlined_call_operand.hbm [shape: bf16[2,8,32], index: 2, kind: input, shape index: {}]   ;;  %s2563_s3 = inlined_call_operand.hbm [shape: bf16[32,32], index: 3, kind: input, shape index: {}]   ;;  %s2564_s4 = inlined_call_operand.vmem [shape: f32[1,32], index: 4, kind: input, shape index: {}]   ;;  %s2565_s5 = inlined_call_operand.vmem [shape: bf16[32,32], index: 5, kind: input, shape index: {}]   ;;  %s2566_s6 = inlined_call_operand.vmem [shape: f32[1,32], index: 6, kind: input, shape index: {}]   ;;  %s2567_s7 = inlined_call_operand.hbm [shape: bf16[32,32], index: 7, kind: input, shape index: {}]   ;;  %s2568_s8 = inlined_call_operand.hbm [shape: f32[1,32], index: 8, kind: input, shape index: {}]   ;;  %s2569_s9 = inlined_call_operand.vmem [shape: bf16[32,32], index: 9, kind: input, shape index: {}]   ;;  %s2570_s10 = inlined_call_operand.vmem [shape: f32[1,32], index: 10, kind: input, shape index: {}]   ;;  %s2571_s11 = inlined_call_operand.hbm [shape: f32[2,8,32], index: 11, kind: output, shape index: {}]  }
   0x1   :  { %2597 = sst [smem:[#allocation30_spill]] %s2561_s1 }
   0x2   :  { %2598 = sst [smem:[#allocation31_spill]] %s2563_s3 }
   0x3   :  { %2599 = sst [smem:[#allocation32_spill]] %s2564_s4 }
   0x4   :  { %2600 = sst [smem:[#allocation33_spill]] %s2566_s6 }
   0x5   :  { %2601 = sst [smem:[#allocation34_spill]] %s2569_s9 }
   0x6   :  { %2602 = sst [smem:[#allocation35_spill]] %s2570_s10 }
   0x7   :  { %2603 = sst [smem:[#allocation36_spill]] %s2571_s11 }
   0x8   :  { %16 = vsyncpa [#allocation6], 0 }
   0x9   :  { %18 = vsyncpa [#allocation6 + $0x1], 0 }
   0xa   :  { %19 = vsyncpa [#allocation9], 0 }
   0xb   :  { %21 = vsyncpa [#allocation9 + $0x1], 0 }
   0xc   :  { %22 = vsyncpa [#allocation12], 0 }
   0xd   :  { %23 = vsyncpa [#allocation15], 0 }
   0xe   :  { %24 = vsyncpa [#allocation7], 0 }
   0xf   :  { %26 = vsyncpa [#allocation7 + $0x1], 0  ;;  %s2117_s17 = smov 0   ;;  %s2119_s18 = smov 0  }
  0x10   :  { %s2121_s19 = smov 0   ;;  %s2123_s20 = smov 0  }
  0x11   :  { %s2125_s21 = smov 0   ;;  %s2127_s22 = smov 0  }
  0x12 LB: > { %2604 = sst [smem:[#allocation22_spill]] %s2018_s17  ;;  %s2148_s23 = sadd.s32 4294967295, %s2038_s22   ;;  %s2038_s22 = sphi %s2127_s22, %s32_s22   ;;  %s2034_s21 = sphi %s2125_s21, %s2652_s21   ;;  %s2030_s20 = sphi %s2123_s20, %s2651_s20   ;;  %s2026_s19 = sphi %s2121_s19, %s2655_s19   ;;  %s2022_s18 = sphi %s2119_s18, %s2654_s18   ;;  %s2018_s17 = sphi %s2117_s17, %s2653_s17  }
  0x13   : > { %2605 = sst [smem:[#allocation23_spill]] %s2030_s20  ;;  %s1465_s24 = sadd.s32 4294967294, %s2038_s22  }
  0x14   : > { %2606 = sst [smem:[#allocation24_spill]] %s2034_s21  ;;  %p66_p0 = scmp.ne.s32.totalorder %s2022_s18, %s2018_s17 }
  0x15   : > { %2607 = sst [smem:[#allocation25_spill]] %s2038_s22  ;;  %p2574_p1 = scmp.eq.s32.totalorder %s2148_s23, 0 }
  0x16   : > { %p318_p3 = scmp.eq.s32.totalorder %s1465_s24, 1  ;;  %p1466_p5 = scmp.ge.s32.totalorder %s2038_s22, 1 }
  0x17   : > { %p2157_p4 = por %p2574_p1, %p66_p0  ;;  %p325_p7 = scmp.lt.s32.totalorder %s2038_s22, 3 }
  0x18   : > { %p2162_p6 = por %p318_p3, %p66_p0  ;;  %s2040_s28 = smov [#allocation11]  }
  0x19   : > { %s2608_s25 = scalar_select %p2157_p4, 1, 0 }
  0x1a   : > { %s2609_s26 = scalar_select %p2162_p6, 1, 0 }
  0x1b   : > { %p2167_p8 = pnand %p1466_p5, %p325_p7  ;;  %s337_s29 = sshll.u32 %s2040_s28, 4  ;;  %s338_s29 = int_to_ptr.vmem [resolvable:$true] %s337_s29 }
  0x1c   : > { %2610 = sst [smem:[#allocation26_spill]] %s2609_s26  ;;  %s44_s12 = sadd.s32 1, %s2034_s21 }
  0x1d   : > { %s2611_s27 = scalar_select %p2167_p8, 1, 0 }
  0x1e   : > { %p1647_p9 = pneg %p2167_p8  ;;  %s2613_s3 = sld [smem:[#allocation31_spill]] }
  0x20   : > { %p2176_p11 = pnand %p1647_p9, %p2574_p1 }
  0x22   : > { %s2612_s30 = scalar_select %p2176_p11, 1, 0 }
  0x23   : > { %p2189_p13 = pneg %p2176_p11 }
  0x24   : > { %s1770_s15 = scalar_lea.hbm %s2613_s3, 256 }
  0x25   : > { %p1771_p12 = scmp.ne.s32.totalorder %s2613_s3, %s1770_s15  ;;  %p1777_p5 = scmp.lt.u32.totalorder %s1770_s15, %s2613_s3 }
  0x26   : > { %s2614_s28 = scalar_select %p2189_p13, 1, 0 }
  0x27   : > { %p1773_p0 = pnand %p2189_p13, %p1771_p12 }
  0x29   : > { %p1774_p3 = pneg %p1773_p0 }
  0x2b   : > { %p1779_p7 = pnand %p1777_p5, %p1774_p3 }
  0x2d   : > { %1782 = shalt.err (!%p1779_p7)
}
  0x2e   : > { %s1783_s13 = scalar_lea.vmem %s338_s29, 256  ;;  %p1791_p2 = scmp.lt.s32.totalorder %s338_s29, %s338_s29 }
  0x2f   : > { %p1784_p9 = scmp.ne.s32.totalorder %s338_s29, %s1783_s13  ;;  %p1792_p6 = scmp.lt.s32.totalorder %s1783_s13, %s1783_s13 }
  0x31   : > { %p1786_p10 = pnand %p1784_p9, %p2189_p13  ;;  %p1793_p4 = por %p1792_p6, %p1791_p2 }
  0x33   : > { %p1787_p1 = pneg %p1786_p10 }
  0x35   : > { %p1794_p8 = pnand %p1793_p4, %p1787_p1 }
  0x37   : > { %1797 = shalt.err (!%p1794_p8)
}
  0x38   : > { %s2578_s14 = smov 64   ;;  %s2579_s17 = smov 4  }
  0x39   : > { %1650 = dma.hbm_to_vmem [thread:$0]  (!%p2176_p11), %s2613_s3, 256, %s338_s29, [#allocation12], %s2578_s14, %s2578_s14, %s2579_s17  }
  0x3a   : > { %p46_p1 = scmp.ge.s32.totalorder %s44_s12, 2  ;;  %s53_s16 = sadd.s32 1, %s2026_s19 }
  0x3b   : > { %p60_p2 = scmp.ne.s32.totalorder %s2026_s19, %s2022_s18  ;;  %p61_p4 = scmp.eq.s32.totalorder %s2038_s22, 0 }
  0x3c   : > { %s2657_s12 = smov (%p46_p1, %s44_s12), 0  ;;  %p2616_p8 = scmp.eq.s32.totalorder %s2148_s23, 1 }
  0x3d   : > { %2615 = sst [smem:[#allocation27_spill]] %s2657_s12  ;;  %p62_p6 = por %p61_p4, %p60_p2 }
  0x3e   : > { %p2216_p10 = por %p2616_p8, %p60_p2  ;;  %s48_s13 = ssub.s32 %s2034_s21, %s2657_s12 }
  0x3f   : > { %p1674_p12 = scmp.lt.s32.totalorder %s2038_s22, 2  ;;  %p51_p0 = scmp.eq.s32.totalorder %s48_s13, 0 }
  0x40   : > { %s2617_s24 = scalar_select %p2216_p10, 1, 0 }
  0x41   : > { %s2581_s11 = sand.u32 1, %s2026_s19   ;;  %s2229_s26 = sshll.u32 %s2034_s21, 6 }
  0x42   : > { %2618 = sst [smem:[#allocation28_spill]] %s2617_s24  ;;  %s2226_s29 = sshll.u32 %s2581_s11, 2 }
  0x43   : > { %s2232_s15 = scalar_select %p51_p0, %s2026_s19, %s53_s16  }
  0x44   : > { %p2234_p3 = pnand %p1674_p12, %p62_p6  ;;  %s409_s17 = sand.u32 1, %s2038_s22  }
  0x45   : > { %2619 = sst [smem:[#allocation29_spill]] %s2232_s15  ;;  %s2621_s1 = sld [smem:[#allocation30_spill]] }
  0x46   : > { %s2620_s14 = scalar_select %p2234_p3, 1, 0 }
  0x47   : > { %s413_s11 = scalar_lea.vmem [#allocation8], %s2226_s29  ;;  %s2043_s16 = smov [#allocation13]  }
  0x48   : > { %s420_s21 = sshll.u32 %s413_s11, 4  ;;  %s2248_s15 = sshll.u32 %s2043_s16, 4  ;;  %s2246_s21 = int_to_ptr.vmem [resolvable:$true] %s420_s21  ;;  %s360_s15 = int_to_ptr.vmem [resolvable:$true] %s2248_s15 }
  0x49   : > { %s2250_s24 = scalar_lea.sflag [#allocation9], %s409_s17  ;;  %p2256_p7 = pneg %p2234_p3 }
  0x4b   : > { %s2243_s13 = scalar_lea.hbm %s2621_s1, %s2229_s26  ;;  %s1803_s22 = scalar_lea.hbm %s2621_s1, 128 }
  0x4c   : > { %s1798_s10 = scalar_lea.hbm %s2243_s13, 64  ;;  %p1804_p2 = scmp.lt.u32.totalorder %s2243_s13, %s2621_s1 }
  0x4d   : > { %p1799_p5 = scmp.ne.s32.totalorder %s2243_s13, %s1798_s10  ;;  %p1805_p4 = scmp.lt.u32.totalorder %s1803_s22, %s1798_s10 }
  0x4e   : > { %s2622_s3 = scalar_select %p2256_p7, 1, 0 }
  0x4f   : > { %p1801_p9 = pnand %p2256_p7, %p1799_p5  ;;  %p1806_p6 = por %p1805_p4, %p1804_p2 }
  0x50   : > { %p1807_p8 = scmp.lt.u32.totalorder %s1798_s10, %s2243_s13 }
  0x51   : > { %p1802_p1 = pneg %p1801_p9 }
  0x52   : > { %p1808_p12 = por %p1807_p8, %p1806_p6 }
  0x54   : > { %p1809_p0 = pnand %p1808_p12, %p1802_p1 }
  0x56   : > { %1812 = shalt.err (!%p1809_p0)
}
  0x57   : > { %s1813_s17 = scalar_lea.vmem %s2246_s21, 64  ;;  %s2044_s12 = smov [#allocation8]  }
  0x58   : > { %p1814_p5 = scmp.ne.s32.totalorder %s2246_s21, %s1813_s17  ;;  %s1818_s11 = sshll.u32 %s2044_s12, 4  ;;  %s1819_s11 = int_to_ptr.vmem [resolvable:$false] %s1818_s11 }
  0x59   : > { %s1820_s20 = scalar_lea.vmem %s1819_s11, 128  ;;  %p1821_p11 = scmp.lt.s32.totalorder %s2246_s21, %s1819_s11 }
  0x5a   : > { %p1816_p9 = pnand %p1814_p5, %p2256_p7  ;;  %p1822_p13 = scmp.lt.s32.totalorder %s1820_s20, %s1813_s17 }
  0x5c   : > { %p1817_p10 = pneg %p1816_p9  ;;  %p1823_p2 = por %p1822_p13, %p1821_p11 }
  0x5e   : > { %p1824_p4 = pnand %p1823_p2, %p1817_p10 }
  0x60   : > { %1827 = shalt.err (!%p1824_p4)
}
  0x61   : > { %1663 = dma.hbm_to_vmem [thread:$0]  (!%p2234_p3), %s2243_s13, 64, %s2246_s21, %s2250_s24  }
  0x62   : > { %s1828_s16 = scalar_lea.hbm %s2567_s7, 256  ;;  %p2623_p11 = scmp.ne.s32.totalorder %s2614_s28, 0 }
  0x63   : > { %p1829_p1 = scmp.ne.s32.totalorder %s2567_s7, %s1828_s16  ;;  %p1835_p6 = scmp.lt.u32.totalorder %s1828_s16, %s2567_s7 }
  0x65   : > { %p1831_p13 = pnand %p1829_p1, %p2623_p11 }
  0x67   : > { %p1832_p10 = pneg %p1831_p13 }
  0x69   : > { %p1837_p8 = pnand %p1835_p6, %p1832_p10 }
  0x6b   : > { %1840 = shalt.err (!%p1837_p8)
}
  0x6c   : > { %s1841_s20 = scalar_lea.vmem %s360_s15, 256  ;;  %p1849_p9 = scmp.lt.s32.totalorder %s360_s15, %s360_s15 }
  0x6d   : > { %p1842_p12 = scmp.ne.s32.totalorder %s360_s15, %s1841_s20  ;;  %p1850_p2 = scmp.lt.s32.totalorder %s1841_s20, %s1841_s20 }
  0x6f   : > { %p1844_p0 = pnand %p1842_p12, %p2623_p11  ;;  %p1851_p4 = por %p1850_p2, %p1849_p9 }
  0x71   : > { %p1845_p5 = pneg %p1844_p0 }
  0x73   : > { %p1852_p3 = pnand %p1851_p4, %p1845_p5 }
  0x75   : > { %1855 = shalt.err (!%p1852_p3)
}
  0x76   : > { %p2624_p1 = scmp.ne.s32.totalorder %s2612_s30, 0  ;;  %s2625_s1 = smov 4  }
  0x77   : > { %s2626_s21 = smov 64   ;;  %s2045_s22 = smov [#allocation14]  }
  0x78   : > { %1653 = dma.hbm_to_vmem [thread:$0]  (!%p2624_p1), %s2567_s7, 256, %s360_s15, [#allocation12], %s2626_s21, %s2626_s21, %s2625_s1  }
  0x79   : > { %s373_s16 = sshll.u32 %s2045_s22, 4  ;;  %s1856_s11 = scalar_lea.hbm %s2568_s8, 16  ;;  %s374_s16 = int_to_ptr.vmem [resolvable:$true] %s373_s16 }
  0x7a   : > { %p1857_p3 = scmp.ne.s32.totalorder %s2568_s8, %s1856_s11  ;;  %p1863_p6 = scmp.lt.u32.totalorder %s1856_s11, %s2568_s8 }
  0x7c   : > { %p1859_p13 = pnand %p1857_p3, %p2623_p11 }
  0x7e   : > { %p1860_p10 = pneg %p1859_p13 }
  0x80   : > { %p1865_p8 = pnand %p1863_p6, %p1860_p10 }
  0x82   : > { %1868 = shalt.err (!%p1865_p8)
}
  0x83   : > { %s1869_s15 = scalar_lea.vmem %s374_s16, 16  ;;  %s1876_s1 = scalar_lea.vmem %s374_s16, 32 }
  0x84   : > { %p1870_p12 = scmp.ne.s32.totalorder %s374_s16, %s1869_s15  ;;  %p1877_p9 = scmp.lt.s32.totalorder %s374_s16, %s374_s16 }
  0x85   : > { %p1878_p2 = scmp.lt.s32.totalorder %s1876_s1, %s1869_s15 }
  0x86   : > { %p1872_p0 = pnand %p1870_p12, %p2623_p11 }
  0x87   : > { %p1879_p4 = por %p1878_p2, %p1877_p9 }
  0x88   : > { %p1873_p5 = pneg %p1872_p0 }
  0x8a   : > { %p1880_p7 = pnand %p1879_p4, %p1873_p5 }
  0x8c   : > { %1883 = shalt.err (!%p1880_p7)
}
  0x8d   : > { %1656 = dma.hbm_to_vmem [thread:$0]  (!%p2624_p1), %s2568_s8, 16, %s374_s16, [#allocation15]  }
  0x8e   : > { %s2324_s28 = scalar_lea.hbm %s2560_s0, %s2229_s26  ;;  %s394_s13 = scalar_lea.vmem [#allocation5], %s2226_s29 }
  0x8f   : > { %s402_s10 = sshll.u32 %s394_s13, 4  ;;  %s2627_s30 = sand.u32 1, %s2026_s19   ;;  %s403_s10 = int_to_ptr.vmem [resolvable:$true] %s402_s10 }
  0x90   : > { %s391_s22 = scalar_lea.sflag [#allocation6], %s2627_s30  ;;  %s1884_s12 = scalar_lea.hbm %s2324_s28, 64 }
  0x91   : > { %p1885_p7 = scmp.ne.s32.totalorder %s2324_s28, %s1884_s12  ;;  %p2628_p11 = scmp.ne.s32.totalorder %s2622_s3, 0 }
  0x92   : > { %s1889_s11 = scalar_lea.hbm %s2560_s0, 128  ;;  %p1890_p1 = scmp.lt.u32.totalorder %s2324_s28, %s2560_s0 }
  0x93   : > { %p1887_p3 = pnand %p1885_p7, %p2628_p11  ;;  %p1891_p10 = scmp.lt.u32.totalorder %s1889_s11, %s1884_s12 }
  0x94   : > { %p1893_p8 = scmp.lt.u32.totalorder %s1884_s12, %s2324_s28 }
  0x95   : > { %p1888_p13 = pneg %p1887_p3  ;;  %p1892_p6 = por %p1891_p10, %p1890_p1 }
  0x97   : > { %p1894_p12 = por %p1893_p8, %p1892_p6 }
  0x99   : > { %p1895_p0 = pnand %p1894_p12, %p1888_p13 }
  0x9b   : > { %1898 = shalt.err (!%p1895_p0)
}
  0x9c   : > { %s1899_s1 = scalar_lea.vmem %s403_s10, 64  ;;  %s2046_s9 = smov [#allocation5]  }
  0x9d   : > { %p1900_p5 = scmp.ne.s32.totalorder %s403_s10, %s1899_s1  ;;  %s1904_s21 = sshll.u32 %s2046_s9, 4  ;;  %s1905_s21 = int_to_ptr.vmem [resolvable:$false] %s1904_s21 }
  0x9e   : > { %s1906_s4 = scalar_lea.vmem %s1905_s21, 128  ;;  %p1907_p4 = scmp.lt.s32.totalorder %s403_s10, %s1905_s21 }
  0x9f   : > { %p1902_p9 = pnand %p1900_p5, %p2628_p11  ;;  %p1908_p7 = scmp.lt.s32.totalorder %s1906_s4, %s1899_s1 }
  0xa1   : > { %p1903_p2 = pneg %p1902_p9  ;;  %p1909_p3 = por %p1908_p7, %p1907_p4 }
  0xa3   : > { %p1910_p1 = pnand %p1909_p3, %p1903_p2 }
  0xa5   : > { %1913 = shalt.err (!%p1910_p1)
}
  0xa6   : > { %p2629_p10 = scmp.ne.s32.totalorder %s2620_s14, 0  ;;  %s2350_s30 = scalar_lea.hbm %s2562_s2, %s2229_s26 }
  0xa7   : > { %s431_s12 = scalar_lea.vmem [#allocation10], %s2226_s29  ;;  %s1914_s17 = scalar_lea.hbm %s2350_s30, 64 }
  0xa8   : > { %1660 = dma.hbm_to_vmem [thread:$0]  (!%p2629_p10), %s2324_s28, 64, %s403_s10, %s391_s22  }
  0xa9   : > { %s438_s16 = sshll.u32 %s431_s12, 4  ;;  %p1915_p13 = scmp.ne.s32.totalorder %s2350_s30, %s1914_s17  ;;  %s439_s16 = int_to_ptr.vmem [resolvable:$true] %s438_s16 }
  0xaa   : > { %s1919_s28 = scalar_lea.hbm %s2562_s2, 128  ;;  %p1920_p12 = scmp.lt.u32.totalorder %s2350_s30, %s2562_s2 }
  0xab   : > { %p1917_p6 = pnand %p1915_p13, %p2628_p11  ;;  %p1921_p0 = scmp.lt.u32.totalorder %s1919_s28, %s1914_s17 }
  0xac   : > { %p1923_p9 = scmp.lt.u32.totalorder %s1914_s17, %s2350_s30 }
  0xad   : > { %p1918_p8 = pneg %p1917_p6  ;;  %p1922_p5 = por %p1921_p0, %p1920_p12 }
  0xaf   : > { %p1924_p2 = por %p1923_p9, %p1922_p5 }
  0xb1   : > { %p1925_p4 = pnand %p1924_p2, %p1918_p8 }
  0xb3   : > { %1928 = shalt.err (!%p1925_p4)
}
  0xb4   : > { %s1929_s29 = scalar_lea.vmem %s439_s16, 64  ;;  %s2047_s26 = smov [#allocation10]  }
  0xb5   : > { %p1930_p7 = scmp.ne.s32.totalorder %s439_s16, %s1929_s29  ;;  %s1934_s15 = sshll.u32 %s2047_s26, 4  ;;  %s1935_s15 = int_to_ptr.vmem [resolvable:$false] %s1934_s15 }
  0xb6   : > { %s1936_s1 = scalar_lea.vmem %s1935_s15, 128  ;;  %p1937_p13 = scmp.lt.s32.totalorder %s439_s16, %s1935_s15 }
  0xb7   : > { %p1932_p3 = pnand %p1930_p7, %p2628_p11  ;;  %p1938_p6 = scmp.lt.s32.totalorder %s1936_s1, %s1929_s29 }
  0xb9   : > { %p1933_p1 = pneg %p1932_p3  ;;  %p1939_p10 = por %p1938_p6, %p1937_p13 }
  0xbb   : > { %p1940_p0 = pnand %p1939_p10, %p1933_p1 }
  0xbd   : > { %1943 = shalt.err (!%p1940_p0)
}
  0xbe   : > { %p2630_p12 = scmp.ne.s32.totalorder %s2620_s14, 0  ;;  %p2631_p8 = scmp.ne.s32.totalorder %s2611_s27, 0 }
  0xbf   : > { %s2374_s3 = sand.u32 (!%p2631_p8), 1, %s2022_s18   ;;  %p2632_p11 = scmp.ne.s32.totalorder (!%p2631_p8), %s2608_s25, 0 }
  0xc0   : > { %1666 = dma.hbm_to_vmem [thread:$0]  (!%p2630_p12), %s2350_s30, 64, %s439_s16, %s2250_s24  }
  0xc1   : > { %447 = sbr.rel (%p2631_p8) target bundleno = 1680 (0x690), region = 64  ;;  %s2377_s9 = sshll.u32 (!%p2631_p8), %s2374_s3, 2 }
  0xc2   : > { %s450_s21 = scalar_lea.sflag (!%p2631_p8), [#allocation6], %s2374_s3  ;;  %s453_s4 = scalar_lea.vmem (!%p2631_p8), [#allocation5], %s2377_s9 }
  0xc8   : > { %1997 = dma.done.wait (%p2632_p11), %s450_s21, 64  }
  0xc9   : > { %1999 = vsyncadd (%p2632_p11), %s450_s21, 4294967232  ;;  %s458_s27 = sand.u32 1, %s2148_s23   ;;  %s462_s24 = scalar_lea.vmem [#allocation8], %s2377_s9 }
  0xca   : > { %s459_s14 = scalar_lea.sflag [#allocation9], %s458_s27 }
  0xcb   : > { %2001 = dma.done.wait (%p2632_p11), %s459_s14, 128  }
  0xcc   : > { %2003 = vsyncadd (%p2632_p11), %s459_s14, 4294967168  ;;  %s471_s6 = scalar_lea.vmem [#allocation10], %s2377_s9  ;;  %p2633_p10 = scmp.eq.s32.totalorder %s2148_s23, 0 }
  0xce   : > { %2005 = dma.done.wait (%p2633_p10), [#allocation12], 512   ;;  %p2634_p5 = pmov %p2633_p10 }
  0xd0   : > { %2007 = vsyncadd (%p2634_p5), [#allocation12], 4294966784  ;;  %p2635_p9 = pmov %p2634_p5 }
  0xd1   : > { %p2636_p2 = pmov %p2634_p5 }
  0xd2   : > { %2009 = dma.done.wait (%p2635_p9), [#allocation15], 16  }
  0xd3   : > { %2011 = vsyncadd (%p2636_p2), [#allocation15], 4294967280  ;;  %v2048_v0 = vmov 0.0   ;;  %vm2049_vm0 = vmmov 0   ;;  %v1740_v1 = vld [vmem:[%s2565_s5] sm:$0xff]   ;;  %v1741_v2 = vld [vmem:[%s2565_s5 + $0x8] sm:$0xff]  }
  0xd4   : > { %1547 = vmatprep.subr.bf16.mxu0 %v2048_v0  ;;  %1551 = vmatprep.mubr.msk.bf16.mxu0 %vm2049_vm0, %v2048_v0  ;;  %v537_v3 = vld [vmem:[%s462_s24] sm:$0xf]  ;;  %vm566_vm1 = vcmask 261120   ;;  %v1742_v4 = vld [vmem:[#allocation11] sm:$0xff]   ;;  %v1743_v5 = vld [vmem:[#allocation11 + $0x8] sm:$0xff]   ;;  %s2637_s17 = sld [smem:[#allocation33_spill]] }
  0xd5   : > { %1555 = vmatprep.subr.bf16.mxu1 %v2048_v0  ;;  %1559 = vmatprep.mubr.msk.bf16.mxu1 %vm2049_vm0, %v2048_v0  ;;  %v677_v6 = vld [vmem:[%s453_s4] sm:$0xf]  ;;  %v1744_v7 = vld [vmem:[#allocation13] sm:$0xff]   ;;  %v1745_v8 = vld [vmem:[#allocation13 + $0x8] sm:$0xff]   ;;  %vm611_vm2 = vcmask 257024   ;;  %s2638_s28 = sld [smem:[#allocation32_spill]] }
  0xd6   : > { %1548 = vmatpush3.bf16.msra.mxu0 %v1740_v1  ;;  %1556 = vmatpush3.bf16.msra.mxu1 %v1744_v7  ;;  %v542_v9 = vld [vmem:[%s471_s6] sm:$0xf]  ;;  %vm748_vm3 = vcmask 64512   ;;  %s2050_s10 = smov 112   ;;  %s2051_s22 = smov 120   ;;  %vm810_vm4 = vcmask 1043456  }
  0xd7   : > { %1549 = vmatprep.subr.bf16.mxu0 %v2048_v0  ;;  %1557 = vmatprep.subr.bf16.mxu1 %v2048_v0  ;;  %s2052_s29 = smov 104   ;;  %v1489_v29 = vld [vmem:[#allocation14] ss:$0 sm:$0xff]  ;;  %s2053_s26 = smov 8   ;;  %vm978_vm5 = vcmask 130112   ;;  %vm1102_vm6 = vcmask 195712  }
  0xd8   : > { %s2639_s9 = sld [smem:[#allocation34_spill]]  ;;  %s2054_s27 = smov 16   ;;  %vm1226_vm7 = vcmask 261312  }
  0xd9   : > { %s2055_s14 = smov 24   ;;  %s2640_s24 = sld [smem:[#allocation23_spill]] }
  0xda   : > { %1550 = vmatpush3.bf16.msra.mxu0 %v1741_v2  ;;  %1558 = vmatpush3.bf16.msra.mxu1 %v1745_v8  ;;  %v1485_v10 = vld [vmem:[%s2637_s17] ss:$0 sm:$0xff]  ;;  %s1484_s6 = sshll.u32 %s2374_s3, 3  ;;  %s2641_s23 = sld [smem:[#allocation35_spill]] }
  0xdb   : > { %1563 = vmatprep.subr.bf16.mxu0 %v2048_v0  ;;  %1571 = vmatprep.subr.bf16.mxu1 %v2048_v0  ;;  %v1493_v17 = vld [vmem:[%s2638_s28] ss:$0 sm:$0xff]  ;;  %s2642_s30 = sld [smem:[#allocation28_spill]]  ;;  %s531_s16 = scalar_lea.vmem [#allocation16], %s1484_s6 }
  0xdc   : > { %s1312_s17 = sshll.u32 %s531_s16, 4  ;;  %s2643_s28 = sld [smem:[#allocation36_spill]]  ;;  %s2512_s17 = int_to_ptr.vmem [resolvable:$true] %s1312_s17 }
  0xdd   : > { %1552 = vmatmul.mubr.msk.bf16.vlgmr.msra.gmra.mrb[0].mxu0 %vm566_vm1, %v537_v3  ;;  %1560 = vmatmul.mubr.msk.bf16.vlgmr.msra.gmra.mrb[0].mxu1 %vm566_vm1, %v542_v9 }
  0xde   : > { %1564 = vmatpush3.bf16.msra.mxu0 %v1742_v4  ;;  %1567 = vmatprep.mubr.msk.bf16.mxu0 %vm2049_vm0, %v2048_v0 }
  0xdf   : > { %1565 = vmatprep.subr.bf16.mxu0 %v2048_v0  ;;  %1573 = vmatprep.mubr.msk.bf16.mxu1 %vm2049_vm0, %v2048_v0  ;;  %s1516_s12 = sshll.u32 %s2640_s24, 7 }
  0xe1   : > { %p2644_p7 = scmp.ne.s32.totalorder %s2642_s30, 0 }
  0xe2   : > { %1566 = vmatpush3.bf16.msra.mxu0 %v1743_v5 }
  0xe3   : > { %1577 = vmatprep.subr.bf16.mxu0 %v2048_v0 }
  0xe5   : > { %1568 = vmatmul.mubr.msk.bf16.vlgmr.msra.gmra.mrb[4].mxu0 %vm566_vm1, %v677_v6 }
  0xe6   : > { %1579 = vmatprep.mubr.msk.bf16.mxu0 %vm2049_vm0, %v2048_v0 }
 0x1b0   : > { %v604_v11 = vpop.f32.mrb[0].mxu0  ;;  %v669_v30 = vpop.f32.mrb[0].mxu1 }
 0x1b1   : > { %v605_v12 = vadd.f32 %v1485_v10, %v604_v11  ;;  %v1553_v13 = vpop.f32.mrb[1].mxu0  ;;  %v670_v31 = vadd.f32 %v1489_v29, %v669_v30  ;;  %v1561_v32 = vpop.f32.mrb[1].mxu1 }
 0x1b2   : > { %v607_v14 = vpop.f32.mrb[2].mxu0  ;;  %v672_v33 = vpop.f32.mrb[2].mxu1 }
 0x1b3   : > { %v610_v15 = vpack.c.bf16 %v605_v12, %v605_v12  ;;  %v1554_v16 = vpop.f32.mrb[3].mxu0  ;;  %v675_v34 = vpack.c.bf16 %v670_v31, %v670_v31  ;;  %v1562_v35 = vpop.f32.mrb[3].mxu1 }
 0x1b5   : > { %612 = vst.msk [vmem:[#allocation2] sm:$0xf] %vm611_vm2, %v610_v15  ;;  %676 = vst.msk [vmem:[#allocation3] sm:$0xf] %vm611_vm2, %v675_v34 }
 0x1b8   : > { %v739_v18 = vpop.f32.mrb[4].mxu0 }
 0x1b9   : > { %v1569_v19 = vpop.f32.mrb[5].mxu0  ;;  %v740_v20 = vadd.f32 %v1493_v17, %v739_v18 }
 0x1ba   : > { %v742_v21 = vpop.f32.mrb[6].mxu0 }
 0x1bb   : > { %v1570_v22 = vpop.f32.mrb[7].mxu0  ;;  %v745_v27 = vpack.c.bf16 %v740_v20, %v740_v20 }
 0x1bc   : > { %v746_v23 = vld [vmem:[#allocation2] sm:$0xf]  ;;  %v747_v36 = vld [vmem:[#allocation3] sm:$0xf] }
 0x1bd   : > { %v1746_v24 = vld [vmem:[#allocation2] ss:$0 sps:$4 sm:$0xff]   ;;  %v753_v25 = vsel %vm748_vm3, %v746_v23, 0  ;;  %v812_v37 = vsel %vm810_vm4, %v747_v36, 0  ;;  %v1749_v9 = vld [vmem:[#allocation3] ss:$0 sps:$4 sm:$0xff]  }
 0x1be   : > { %v1747_v26 = vld [vmem:[#allocation2] ss:$0 sps:$4 sm:$0xff]   ;;  %1572 = vmatpush3.bf16.xpose.msra.mxu1 %v753_v25  ;;  %987 = vrot.lane.b32.xlu1 %v1746_v24, %s2050_s10  ;;  %v1750_v25 = vld [vmem:[#allocation3] ss:$0 sps:$4 sm:$0xff]  }
 0x1bf   : > { %863 = vrot.lane.b32.xlu0 %v1747_v26, %s2051_s22  ;;  %1583 = vmatprep.subr.bf16.mxu1 %v2048_v0  ;;  %v1748_v28 = vld [vmem:[#allocation2] ss:$0 sps:$4 sm:$0xff]   ;;  %v1751_v29 = vld [vmem:[#allocation3] ss:$0 sps:$4 sm:$0xff]  }
 0x1c0   : > { %1578 = vmatpush3.bf16.msra.mxu0 %v812_v37 }
 0x1c1   : > { %1589 = vmatprep.subr.bf16.mxu0 %v2048_v0 }
 0x1c2   : > { %982 = vrot.lane.b32.xlu1 %v745_v27, %s2050_s10 }
 0x1c3   : > { %858 = vrot.lane.b32.xlu0 %v745_v27, %s2051_s22 }
 0x1c5   : > { %1574 = vmatmul.mubr.msk.bf16.vlgmr.msra.gmra.mrb[4].mxu1 %vm748_vm3, %v745_v27 }
 0x1c6   : > { %1106 = vrot.lane.b32.xlu1 %v745_v27, %s2052_s29  ;;  %1585 = vmatprep.mubr.msk.bf16.mxu1 %vm2049_vm0, %v2048_v0 }
 0x1c7   : > { %1111 = vrot.lane.b32.xlu0 %v1748_v28, %s2052_s29 }
 0x230   : > { %v988_v40 = vpop.permute.xlu1 %987 }
 0x231   : > { %v864_v38 = vpop.permute.xlu0 %863  ;;  %v993_v42 = vsel %vm748_vm3, %v988_v40, 0 }
 0x232   : > { %v869_v39 = vsel %vm748_vm3, %v864_v38, 0 }
 0x233   : > { %1584 = vmatpush3.bf16.xpose.msra.mxu1 %v869_v39 }
 0x234   : > { %1595 = vmatprep.subr.bf16.mxu1 %v2048_v0  ;;  %v983_v44 = vpop.permute.xlu1 %982 }
 0x235   : > { %v859_v41 = vpop.permute.xlu0 %858 }
 0x238   : > { %v1107_v46 = vpop.permute.xlu1 %1106 }
 0x239   : > { %v1112_v43 = vpop.permute.xlu0 %1111 }
 0x23a   : > { %1586 = vmatmul.mubr.msk.bf16.vlgmr.msra.gmra.mrb[8].mxu1 %vm748_vm3, %v859_v41  ;;  %v1117_v45 = vsel %vm748_vm3, %v1112_v43, 0 }
 0x23b   : > { %1596 = vmatpush3.bf16.xpose.msra.mxu1 %v993_v42  ;;  %1597 = vmatprep.mubr.msk.bf16.mxu1 %vm2049_vm0, %v2048_v0 }
 0x23c   : > { %1607 = vmatprep.subr.bf16.mxu1 %v2048_v0 }
 0x242   : > { %1598 = vmatmul.mubr.msk.bf16.vlgmr.msra.gmra.mrb[12].mxu1 %vm748_vm3, %v983_v44 }
 0x243   : > { %1608 = vmatpush3.bf16.xpose.msra.mxu1 %v1117_v45  ;;  %1609 = vmatprep.mubr.msk.bf16.mxu1 %vm2049_vm0, %v2048_v0 }
 0x244   : > { %1619 = vmatprep.subr.bf16.mxu1 %v2048_v0 }
 0x24a   : > { %1610 = vmatmul.mubr.msk.bf16.vlgmr.msra.gmra.mrb[16].mxu1 %vm748_vm3, %v1107_v46 }
 0x24b   : > { %1623 = vmatprep.mubr.msk.bf16.mxu1 %vm2049_vm0, %v2048_v0 }
 0x298   : > { %v789_v47 = vpop.f32.mrb[4].mxu1 }
 0x299   : > { %v1575_v48 = vpop.f32.mrb[5].mxu1  ;;  %v795_v49 = vsel %vm748_vm3, %v789_v47, -inf }
 0x29a   : > { %796 = vmax.xlane.f32.xlu0 %v795_v49  ;;  %v792_v50 = vpop.f32.mrb[6].mxu1 }
 0x29b   : > { %v1576_v51 = vpop.f32.mrb[7].mxu1 }
 0x30d   : > { %v905_v52 = vpop.f32.mrb[8].mxu1 }
 0x30e   : > { %v1587_v53 = vpop.f32.mrb[9].mxu1  ;;  %v911_v54 = vsel %vm748_vm3, %v905_v52, -inf }
 0x30f   : > { %912 = vmax.xlane.f32.xlu1 %v911_v54  ;;  %v908_v55 = vpop.f32.mrb[10].mxu1 }
 0x310   : > { %v1588_v56 = vpop.f32.mrb[11].mxu1 }
 0x315   : > { %v1029_v57 = vpop.f32.mrb[12].mxu1 }
 0x316   : > { %v1599_v58 = vpop.f32.mrb[13].mxu1  ;;  %v1035_v59 = vsel %vm748_vm3, %v1029_v57, -inf }
 0x317   : > { %1036 = vmax.xlane.f32.xlu0 %v1035_v59  ;;  %v1032_v60 = vpop.f32.mrb[14].mxu1  ;;  %v1753_v58 = vld [vmem:[%s2639_s9 + $0x8] sm:$0xff]  }
 0x318   : > { %v1600_v61 = vpop.f32.mrb[15].mxu1 }
 0x31d   : > { %v1153_v62 = vpop.f32.mrb[16].mxu1 }
 0x31e   : > { %v1611_v63 = vpop.f32.mrb[17].mxu1  ;;  %v1159_v1 = vsel %vm748_vm3, %v1153_v62, -inf }
 0x31f   : > { %1160 = vmax.xlane.f32.xlu0 %v1159_v1  ;;  %v1156_v2 = vpop.f32.mrb[18].mxu1 }
 0x320   : > { %v1612_v3 = vpop.f32.mrb[19].mxu1 }
 0x327   : > { %v797_v4 = vpop.xlane.xlu0 %796 }
 0x328   : > { %v798_v5 = vsub.f32 %v789_v47, %v797_v4 }
 0x32a   : > { %v799_v6 = vmul.f32 1.442695, %v798_v5 }
 0x32c   : > { %1754 = vpow2.f32 %v799_v6 }
 0x336   : > { %v1755_v7 = vpop.eup %1754 }
 0x337   : > { %v801_v8 = vsel %vm748_vm3, %v1755_v7, 0.0 }
 0x338   : > { %802 = vadd.xlane.f32.xlu1 %v801_v8  ;;  %v1511_v8 = vld [vmem:[%s2641_s23] ss:$0 sm:$0xff] }
 0x349   : > { %926 = vrot.lane.b32.xlu1 %v1749_v9, %s2051_s22  ;;  %s1298_s22 = scalar_lea.sflag [#allocation7], %s2374_s3 }
 0x39c   : > { %v913_v10 = vpop.xlane.xlu1 %912 }
 0x39d   : > { %v914_v11 = vsub.f32 %v905_v52, %v913_v10 }
 0x39f   : > { %v915_v12 = vmul.f32 1.442695, %v914_v11 }
 0x3a1   : > { %1756 = vpow2.f32 %v915_v12 }
 0x3a4   : > { %v1037_v13 = vpop.xlane.xlu0 %1036 }
 0x3a5   : > { %v1038_v14 = vsub.f32 %v1029_v57, %v1037_v13  ;;  %v1752_v57 = vld [vmem:[%s2639_s9] sm:$0xff]  }
 0x3a6   : > { %1620 = vmatpush3.bf16.msra.mxu1 %v1752_v57 }
 0x3a7   : > { %v1039_v15 = vmul.f32 1.442695, %v1038_v14  ;;  %1621 = vmatprep.subr.bf16.mxu1 %v2048_v0 }
 0x3a9   : > { %1758 = vpow2.f32 %v1039_v15 }
 0x3aa   : > { %1622 = vmatpush3.bf16.msra.mxu1 %v1753_v58 }
 0x3ab   : > { %v1757_v16 = vpop.eup %1756 }
 0x3ac   : > { %v1161_v17 = vpop.xlane.xlu0 %1160  ;;  %v917_v18 = vsel %vm748_vm3, %v1757_v16, 0.0 }
 0x3ad   : > { %v1162_v19 = vsub.f32 %v1153_v62, %v1161_v17  ;;  %918 = vadd.xlane.f32.xlu0 %v917_v18 }
 0x3af   : > { %v1163_v20 = vmul.f32 1.442695, %v1162_v19 }
 0x3b1   : > { %1760 = vpow2.f32 %v1163_v20 }
 0x3b3   : > { %v1759_v21 = vpop.eup %1758 }
 0x3b4   : > { %v1041_v22 = vsel %vm748_vm3, %v1759_v21, 0.0 }
 0x3b5   : > { %1042 = vadd.xlane.f32.xlu1 %v1041_v22 }
 0x3bb   : > { %v1761_v23 = vpop.eup %1760 }
 0x3bc   : > { %v1165_v24 = vsel %vm748_vm3, %v1761_v23, 0.0 }
 0x3bd   : > { %1166 = vadd.xlane.f32.xlu0 %v1165_v24 }
 0x3c5   : > { %v803_v26 = vpop.xlane.xlu1 %802 }
 0x3c6   : > { %1762 = vrcp.f32 %v803_v26  ;;  %1174 = vrot.lane.b32.xlu1 %v1750_v25, %s2052_s29  ;;  %s1944_s29 = scalar_lea.vmem %s2512_s17, 128 }
 0x3c7   : > { %p1945_p4 = scmp.ne.s32.totalorder %s2512_s17, %s1944_s29 }
 0x3c9   : > { %v927_v30 = vpop.permute.xlu1 %926  ;;  %p1946_p3 = pnand %p1945_p4, %p2644_p7 }
 0x3ca   : > { %v932_v32 = vsel %vm810_vm4, %v927_v30, 0 }
 0x3cb   : > { %p1947_p1 = pneg %p1946_p3 }
 0x3d0   : > { %v1763_v27 = vpop.eup %1762 }
 0x3d1   : > { %v805_v28 = vmul.f32 %v1763_v27, %v1755_v7 }
 0x3d3   : > { %1050 = vrot.lane.b32.xlu0 %v1751_v29, %s2050_s10  ;;  %v806_v31 = vpack.c.bf16 %v805_v28, %v805_v28  ;;  %s2510_s10 = scalar_lea.hbm %s2643_s28, %s1516_s12 }
 0x3d5   : > { %1580 = vmatmul.mubr.msk.bf16.vlgmr.msra.gmra.mrb[8].mxu0 %vm748_vm3, %v806_v31 }
 0x3d6   : > { %1590 = vmatpush3.bf16.msra.mxu0 %v932_v32  ;;  %1591 = vmatprep.mubr.msk.bf16.mxu0 %vm2049_vm0, %v2048_v0 }
 0x3d7   : > { %1601 = vmatprep.subr.bf16.mxu0 %v2048_v0 }
 0x43a   : > { %v919_v33 = vpop.xlane.xlu0 %918 }
 0x43b   : > { %1764 = vrcp.f32 %v919_v33 }
 0x442   : > { %v1043_v34 = vpop.xlane.xlu1 %1042 }
 0x443   : > { %1766 = vrcp.f32 %v1043_v34 }
 0x445   : > { %v1765_v35 = vpop.eup %1764 }
 0x446   : > { %v921_v36 = vmul.f32 %v1765_v35, %v1757_v16  ;;  %v1175_v43 = vpop.permute.xlu1 %1174 }
 0x447   : > { %v1180_v45 = vsel %vm810_vm4, %v1175_v43, 0 }
 0x448   : > { %v922_v37 = vpack.c.bf16 %v921_v36, %v921_v36 }
 0x44a   : > { %1592 = vmatmul.mubr.msk.bf16.vlgmr.msra.gmra.mrb[12].mxu0 %vm748_vm3, %v922_v37  ;;  %v1167_v38 = vpop.xlane.xlu0 %1166 }
 0x44b   : > { %1768 = vrcp.f32 %v1167_v38  ;;  %1603 = vmatprep.mubr.msk.bf16.mxu0 %vm2049_vm0, %v2048_v0 }
 0x44d   : > { %v1767_v39 = vpop.eup %1766 }
 0x44e   : > { %v1045_v40 = vmul.f32 %v1767_v39, %v1759_v21  ;;  %v1051_v41 = vpop.permute.xlu0 %1050 }
 0x44f   : > { %v1056_v42 = vsel %vm810_vm4, %v1051_v41, 0 }
 0x450   : > { %1602 = vmatpush3.bf16.msra.mxu0 %v1056_v42  ;;  %v1046_v44 = vpack.c.bf16 %v1045_v40, %v1045_v40 }
 0x451   : > { %1613 = vmatprep.subr.bf16.mxu0 %v2048_v0 }
 0x453   : > { %1604 = vmatmul.mubr.msk.bf16.vlgmr.msra.gmra.mrb[16].mxu0 %vm748_vm3, %v1046_v44 }
 0x454   : > { %1614 = vmatpush3.bf16.msra.mxu0 %v1180_v45  ;;  %1615 = vmatprep.mubr.msk.bf16.mxu0 %vm2049_vm0, %v2048_v0 }
 0x455   : > { %v1769_v46 = vpop.eup %1768 }
 0x456   : > { %v1169_v47 = vmul.f32 %v1769_v46, %v1761_v23 }
 0x458   : > { %v1170_v48 = vpack.c.bf16 %v1169_v47, %v1169_v47 }
 0x45b   : > { %1616 = vmatmul.mubr.msk.bf16.vlgmr.msra.gmra.mrb[20].mxu0 %vm748_vm3, %v1170_v48 }
 0x4a8   : > { %v848_v49 = vpop.f32.mrb[8].mxu0 }
 0x4a9   : > { %854 = vst.msk [vmem:[#allocation4] sm:$0xff] %vm748_vm3, %v848_v49  ;;  %v1581_v50 = vpop.f32.mrb[9].mxu0 }
 0x4aa   : > { %v851_v51 = vpop.f32.mrb[10].mxu0 }
 0x4ab   : > { %v1582_v52 = vpop.f32.mrb[11].mxu0 }
 0x51d   : > { %v968_v53 = vpop.f32.mrb[12].mxu0 }
 0x51e   : > { %975 = vrot.lane.b32.xlu1 %v968_v53, %s2053_s26  ;;  %v1593_v54 = vpop.f32.mrb[13].mxu0  ;;  %s2056_s26 = smov [#allocation16]  }
 0x51f   : > { %v971_v55 = vpop.f32.mrb[14].mxu0  ;;  %s1948_s15 = sshll.u32 %s2056_s26, 4  ;;  %s1949_s15 = int_to_ptr.vmem [resolvable:$false] %s1948_s15 }
 0x520   : > { %v1594_v56 = vpop.f32.mrb[15].mxu0  ;;  %s1950_s1 = scalar_lea.vmem %s1949_s15, 256  ;;  %p1951_p13 = scmp.lt.s32.totalorder %s2512_s17, %s1949_s15 }
 0x521   : > { %p1952_p6 = scmp.lt.s32.totalorder %s1950_s1, %s1944_s29 }
 0x523   : > { %p1953_p0 = por %p1952_p6, %p1951_p13 }
 0x525   : > { %p1954_p12 = pnand %p1953_p0, %p1947_p1 }
 0x526   : > { %v1092_v59 = vpop.f32.mrb[16].mxu0 }
 0x527   : > { %1099 = vrot.lane.b32.xlu0 %v1092_v59, %s2054_s27  ;;  %v1605_v60 = vpop.f32.mrb[17].mxu0 }
 0x528   : > { %v1095_v61 = vpop.f32.mrb[18].mxu0 }
 0x529   : > { %v1606_v62 = vpop.f32.mrb[19].mxu0 }
 0x52e   : > { %v1216_v63 = vpop.f32.mrb[20].mxu0 }
 0x52f   : > { %1223 = vrot.lane.b32.xlu1 %v1216_v63, %s2055_s14  ;;  %v1617_v1 = vpop.f32.mrb[21].mxu0 }
 0x530   : > { %v1219_v2 = vpop.f32.mrb[22].mxu0 }
 0x531   : > { %v1618_v3 = vpop.f32.mrb[23].mxu0 }
 0x590   : > { %v976_v4 = vpop.permute.xlu1 %975 }
 0x591   : > { %979 = vst.msk [vmem:[#allocation4] sm:$0xff] %vm978_vm5, %v976_v4 }
 0x599   : > { %v1100_v0 = vpop.permute.xlu0 %1099 }
 0x59a   : > { %1103 = vst.msk [vmem:[#allocation4] sm:$0xff] %vm1102_vm6, %v1100_v0 }
 0x5a1   : > { %v1224_v5 = vpop.permute.xlu1 %1223 }
 0x5a2   : > { %1227 = vst.msk [vmem:[#allocation4] sm:$0xff] %vm1226_vm7, %v1224_v5 }
 0x5a9   : > { %v1228_v6 = vld [vmem:[#allocation4] sm:$0xff] }
 0x5aa   : > { %v1229_v7 = vpack.c.bf16 %v1228_v6, %v1228_v6 }
 0x5ac   : > { %1624 = vmatmul.mubr.msk.bf16.vlgmr.msra.gmra.mrb[20].mxu1 %vm566_vm1, %v1229_v7 }
 0x67f   : > { %v1290_v9 = vpop.f32.mrb[20].mxu1 }
 0x680   : > { %v1291_v10 = vadd.f32 %v1511_v8, %v1290_v9  ;;  %v1625_v11 = vpop.f32.mrb[21].mxu1 }
 0x681   : > { %v1293_v12 = vpop.f32.mrb[22].mxu1 }
 0x682   : > { %v1626_v13 = vpop.f32.mrb[23].mxu1  ;;  %1296 = vst.msk [vmem:[%s531_s16] sm:$0xff] %vm566_vm1, %v1291_v10 }
 0x683   : > { %1957 = shalt.err (!%p1954_p12)
}
 0x684   : > { %s1958_s3 = scalar_lea.hbm %s2510_s10, 128  ;;  %s1962_s27 = scalar_lea.hbm %s2643_s28, 256 }
 0x685   : > { %p1959_p8 = scmp.ne.s32.totalorder %s2510_s10, %s1958_s3  ;;  %p1963_p5 = scmp.lt.u32.totalorder %s2510_s10, %s2643_s28 }
 0x686   : > { %p1964_p9 = scmp.lt.u32.totalorder %s1962_s27, %s1958_s3  ;;  %p1966_p4 = scmp.lt.u32.totalorder %s1958_s3, %s2510_s10 }
 0x687   : > { %p1960_p11 = pnand %p1959_p8, %p2644_p7 }
 0x688   : > { %p1965_p2 = por %p1964_p9, %p1963_p5 }
 0x689   : > { %p1961_p10 = pneg %p1960_p11 }
 0x68a   : > { %p1967_p3 = por %p1966_p4, %p1965_p2 }
 0x68c   : > { %p1968_p1 = pnand %p1967_p3, %p1961_p10 }
 0x68e   : > { %1971 = shalt.err (!%p1968_p1)
}
 0x68f   : > { %1645 = dma.vmem_to_hbm [thread:$0]  (%p2644_p7), %s2512_s17, 128, %s2510_s10, %s1298_s22  }
 0x690 PF: > { %s2645_s6 = sld [smem:[#allocation22_spill]]  ;;  %s2646_s25 = sld [smem:[#allocation26_spill]] }
 0x691   : > { %s2647_s13 = sld [smem:[#allocation25_spill]] }
 0x696   : > { %s1324_s23 = sand.u32 1, %s2645_s6   ;;  %p2648_p13 = scmp.ne.s32.totalorder %s2646_s25, 0 }
 0x697   : > { %p2649_p6 = scmp.ge.s32.totalorder %s2647_s13, 2  ;;  %s1325_s12 = scalar_lea.sflag [#allocation7], %s1324_s23 }
 0x699   : > { %p1668_p0 = pnand %p2649_p6, %p2648_p13 }
 0x69b   : > { %2013 = dma.done.wait (!%p1668_p0), %s1325_s12, 128  }
 0x69c   : > { %2015 = vsyncadd (!%p1668_p0), %s1325_s12, 4294967168  ;;  %s32_s22 = sadd.s32 1, %s2647_s13   ;;  %s2650_s30 = sld [smem:[#allocation29_spill]] }
 0x69d   : > { %p29_p12 = scmp.ge.s32.totalorder %s32_s22, 4   ;;  %s2651_s20 = sld [smem:[#allocation24_spill]] }
 0x69e   : > { %s2652_s21 = sld [smem:[#allocation27_spill]]  ;;  %s2653_s17 = smov %s2022_s18 }
 0x69f   : > { %s2654_s18 = smov %s2026_s19  ;;  %31 = sbr.rel (!%p29_p12) target bundleno = 18 (0x12), region = 149 }
 0x6a2   : > { %s2655_s19 = smov %s2650_s30 }
 0x6a6   :  { %1330 = vsyncpa [#allocation6], 1 }
 0x6a7   :  { %1332 = vsyncpa [#allocation6 + $0x1], 1 }
 0x6a8   :  { %1333 = vsyncpa [#allocation9], 1 }
 0x6a9   :  { %1335 = vsyncpa [#allocation9 + $0x1], 1 }
 0x6aa   :  { %1336 = vsyncpa [#allocation12], 1 }
 0x6ab   :  { %1337 = vsyncpa [#allocation15], 1 }
 0x6ac   :  { %1338 = vsyncpa [#allocation7], 1 }
 0x6ad   :  { %1340 = vsyncpa [#allocation7 + $0x1], 1 }

</bundles_post_ra>
